<compile_context>
chip_gen: v7x
topology: tpu7x:2x2x1
jax: 0.10.0
libtpu: 0.0.40
codegen_flags: <defaults>
</compile_context>

<pallas_src>
import functools

import jax
import jax.numpy as jnp
import numpy as np
from jax import lax
from jax.experimental import pallas as pl
from jax.experimental.pallas import tpu as pltpu

MARGIN = 2.0
EPS = 1e-6  # F.pairwise_distance default eps (added to the difference)


def _round_up(x, m):
    return (x + m - 1) // m * m


def _sublane_multiple(dtype):
    # Sublane packing: 8 rows for 4-byte, 16 for 2-byte, 32 for 1-byte dtypes.
    return {4: 8, 2: 16, 1: 32}.get(jnp.dtype(dtype).itemsize, 8)


def _vmem_capacity_bytes():
    try:
        return int(pltpu.get_tpu_info().vmem_capacity_bytes)
    except Exception:
        return 64 << 20  # conservative fallback (v7x per-TC physical VMEM)


def _contrastive_kernel(x1_ref, x2_ref, out_ref, acc_ref,
                        *, margin, n_rows, tile_b, need_mask):
    """One (tile_b, D) slab of each input per grid step.

    acc_ref (tile_b, 1): per-sublane partial sums of
        dist^2 + max(margin - dist, 0)^2   (rows past n_rows masked to 0).
    Finalized (cross-sublane sum + /n_rows) on the last grid step.
    """
    i = pl.program_id(0)

    @pl.when(i == 0)
    def _():
        acc_ref[...] = jnp.zeros_like(acc_ref)

    x1 = x1_ref[...].astype(jnp.float32)             # (tile_b, D)
    x2 = x2_ref[...].astype(jnp.float32)             # (tile_b, D)

    diff = x1 - x2 + EPS
    sq = jnp.sum(diff * diff, axis=1, keepdims=True)          # (tile_b, 1) = dist^2
    dist = jnp.sqrt(sq)                                        # (tile_b, 1)
    hinge = jnp.maximum(margin - dist, 0.0)                    # (tile_b, 1)
    per_row = sq + hinge * hinge                               # (tile_b, 1)

    if need_mask:
        # Ragged last block: rows beyond the true batch hold unspecified data.
        # jnp.where (not multiply) so NaN/Inf in those rows cannot leak in.
        row_ids = lax.broadcasted_iota(jnp.int32, (tile_b, 1), 0) + i * tile_b
        per_row = jnp.where(row_ids < n_rows, per_row, 0.0)

    acc_ref[...] += per_row

    @pl.when(i == pl.num_programs(0) - 1)
    def _():
        total = jnp.sum(acc_ref[...], axis=0, keepdims=True)   # (1, 1)
        out_ref[...] = total / float(n_rows)


def contrastive_loss(output1, output2, margin=MARGIN, vmem_budget_frac=0.45):
    """Pallas equivalent of ContrastiveLoss.forward(output1, output2)."""
    assert output1.shape == output2.shape and output1.ndim == 2
    b, d = output1.shape
    itemsize = jnp.dtype(output1.dtype).itemsize
    sub = _sublane_multiple(output1.dtype)

    # --- tile_b from a VMEM budget -------------------------------------------
    # Bytes that scale with tile_b:
    #   2 inputs x 2 pipeline buffers x D x itemsize   (double-buffered slabs)
    # + 128 x 4                                         (lane-padded f32 scratch row)
    phys_vmem = _vmem_capacity_bytes()
    input_budget = int(phys_vmem * vmem_budget_frac)   # ~28 MiB v7x, ~57 MiB v5e/v6e
    per_row_bytes = 4 * d * itemsize + 128 * 4
    tile_b = max(input_budget // per_row_bytes, sub)
    tile_b = (tile_b // sub) * sub                      # dtype sublane multiple
    tile_b = min(tile_b, _round_up(b, sub))             # never exceed (rounded) batch
    tile_b = max(tile_b, sub)

    grid = (pl.cdiv(b, tile_b),)
    need_mask = (b % tile_b) != 0

    vmem_need = 4 * tile_b * d * itemsize + tile_b * 128 * 4 + (2 << 20)
    vmem_limit = int(min(phys_vmem * 0.9, max(vmem_need, 16 << 20)))

    out = pl.pallas_call(
        functools.partial(_contrastive_kernel, margin=float(margin),
                          n_rows=b, tile_b=tile_b, need_mask=need_mask),
        out_shape=jax.ShapeDtypeStruct((1, 1), jnp.float32),
        grid_spec=pltpu.PrefetchScalarGridSpec(
            num_scalar_prefetch=0,
            grid=grid,
            in_specs=[
                pl.BlockSpec((tile_b, d), lambda i: (i, 0)),
                pl.BlockSpec((tile_b, d), lambda i: (i, 0)),
            ],
            out_specs=pl.BlockSpec((1, 1), lambda i: (0, 0)),
            scratch_shapes=[
                pltpu.VMEM((tile_b, 1), jnp.float32),   # per-row partial sums
            ],
        ),
        compiler_params=pltpu.CompilerParams(
            dimension_semantics=("arbitrary",),          # output is an accumulator
            vmem_limit_bytes=vmem_limit),
    )(output1, output2)
    return out[0, 0]


# ------------------------- pure-JAX reference -------------------------------
def _ref_contrastive(output1, output2, margin=MARGIN):
    diff = output1.astype(jnp.float32) - output2.astype(jnp.float32) + EPS
    dist = jnp.sqrt(jnp.sum(diff * diff, axis=1, keepdims=True))   # (B, 1)
    loss = jnp.mean(dist * dist + jnp.maximum(margin - dist, 0.0) ** 2)
    return loss


if __name__ == "__main__":
    key = jax.random.PRNGKey(0)
    batch, hidden = 50, 32          # non-multiple-of-tile batch exercises masking

    k1, k2 = jax.random.split(key)
    output1 = jax.random.normal(k1, (batch, hidden), dtype=jnp.float32)
    output2 = jax.random.normal(k2, (batch, hidden), dtype=jnp.float32)

    loss = jax.block_until_ready(contrastive_loss(output1, output2))
    ref = jax.block_until_ready(_ref_contrastive(output1, output2))
    np.testing.assert_allclose(np.asarray(loss), np.asarray(ref),
                               rtol=1e-5, atol=1e-5)

    # bf16 path: checks the 16-row sublane rounding + in-kernel f32 cast.
    o1_bf = output1.astype(jnp.bfloat16)
    o2_bf = output2.astype(jnp.bfloat16)
    loss_bf = jax.block_until_ready(contrastive_loss(o1_bf, o2_bf))
    ref_bf = jax.block_until_ready(_ref_contrastive(o1_bf, o2_bf))
    np.testing.assert_allclose(np.asarray(loss_bf), np.asarray(ref_bf),
                               rtol=2e-2, atol=2e-2)

    print("KERNEL_OK")
</pallas_src>

<mosaic_0001>
module attributes {stable_mosaic.version = 11 : i64} {
  func.func @_contrastive_kernel(%arg0: i32, %arg1: memref<56x32xf32, #tpu.memory_space<vmem>>, %arg2: memref<56x32xf32, #tpu.memory_space<vmem>>, %arg3: memref<1x1xf32, #tpu.memory_space<vmem>>, %arg4: memref<56x1xf32, #tpu.memory_space<vmem>>) attributes {dimension_semantics = [#tpu.dimension_semantics<arbitrary>], iteration_bounds = array<i64: 1>, scalar_prefetch = 0 : i64, scratch_operands = 1 : i64, tpu.core_type = #tpu.core_type<tc>, window_params = [{transform_indices = @transform_0, window_bounds = array<i64: 56, 32>}, {transform_indices = @transform_1, window_bounds = array<i64: 56, 32>}, {pipeline_mode = #tpu.pipeline_mode<synchronous>, transform_indices = @transform_2, window_bounds = array<i64: 1, 1>}]} {
    %c0_i32 = arith.constant 0 : i32
    %0 = arith.cmpi eq, %arg0, %c0_i32 : i32
    %1 = arith.extui %0 : i1 to i32
    %c0_i32_0 = arith.constant 0 : i32
    %2 = arith.cmpi ne, %1, %c0_i32_0 : i32
    scf.if %2 {
      %cst_14 = arith.constant 0.000000e+00 : f32
      %32 = vector.broadcast %cst_14 : f32 to vector<56x1xf32>
      %c0_15 = arith.constant 0 : index
      %c0_16 = arith.constant 0 : index
      %33 = vector.load %arg4[%c0_15, %c0_16] : memref<56x1xf32, #tpu.memory_space<vmem>>, vector<56x1xf32>
      tpu.vector_store %arg4[%c0_15, %c0_16], %32 {strides = array<i32>} : memref<56x1xf32, #tpu.memory_space<vmem>>, vector<56x1xf32>,
    } else {
    }
    %c0 = arith.constant 0 : index
    %c0_1 = arith.constant 0 : index
    %3 = vector.load %arg1[%c0, %c0_1] : memref<56x32xf32, #tpu.memory_space<vmem>>, vector<56x32xf32>
    %c0_2 = arith.constant 0 : index
    %c0_3 = arith.constant 0 : index
    %4 = vector.load %arg2[%c0_2, %c0_3] : memref<56x32xf32, #tpu.memory_space<vmem>>, vector<56x32xf32>
    %5 = arith.subf %3, %4 : vector<56x32xf32>
    %cst = arith.constant 9.99999997E-7 : f32
    %6 = vector.broadcast %cst : f32 to vector<56x32xf32>
    %7 = arith.addf %5, %6 : vector<56x32xf32>
    %8 = arith.mulf %7, %7 : vector<56x32xf32>
    %cst_4 = arith.constant dense<0.000000e+00> : vector<56xf32>
    %9 = vector.multi_reduction <add>, %8, %cst_4 [1] : vector<56x32xf32> to vector<56xf32>
    %10 = vector.shape_cast %9 : vector<56xf32> to vector<56x1xf32>
    %11 = math.sqrt %10 : vector<56x1xf32>
    %cst_5 = arith.constant 2.000000e+00 : f32
    %12 = vector.broadcast %cst_5 : f32 to vector<56x1xf32>
    %13 = arith.subf %12, %11 : vector<56x1xf32>
    %cst_6 = arith.constant 0.000000e+00 : f32
    %14 = vector.broadcast %cst_6 : f32 to vector<56x1xf32>
    %15 = arith.maximumf %13, %14 : vector<56x1xf32>
    %16 = arith.mulf %15, %15 : vector<56x1xf32>
    %17 = arith.addf %10, %16 : vector<56x1xf32>
    %18 = tpu.iota {dimensions = array<i32: 0>} : vector<56x1xi32>
    %c56_i32 = arith.constant 56 : i32
    %19 = arith.muli %arg0, %c56_i32 : i32
    %20 = vector.broadcast %19 : i32 to vector<56x1xi32>
    %21 = arith.addi %18, %20 : vector<56x1xi32>
    %c50_i32 = arith.constant 50 : i32
    %22 = vector.broadcast %c50_i32 : i32 to vector<56x1xi32>
    %23 = arith.cmpi slt, %21, %22 : vector<56x1xi32>
    %cst_7 = arith.constant 0.000000e+00 : f32
    %24 = vector.broadcast %cst_7 : f32 to vector<56x1xf32>
    %25 = arith.select %23, %17, %24 : vector<56x1xi1>, vector<56x1xf32>
    %c0_8 = arith.constant 0 : index
    %c0_9 = arith.constant 0 : index
    %26 = vector.load %arg4[%c0_8, %c0_9] : memref<56x1xf32, #tpu.memory_space<vmem>>, vector<56x1xf32>
    %27 = arith.addf %26, %25 : vector<56x1xf32>
    %c0_10 = arith.constant 0 : index
    %c0_11 = arith.constant 0 : index
    %28 = vector.load %arg4[%c0_10, %c0_11] : memref<56x1xf32, #tpu.memory_space<vmem>>, vector<56x1xf32>
    tpu.vector_store %arg4[%c0_10, %c0_11], %27 {strides = array<i32>} : memref<56x1xf32, #tpu.memory_space<vmem>>, vector<56x1xf32>,
    %c0_i32_12 = arith.constant 0 : i32
    %29 = arith.cmpi eq, %arg0, %c0_i32_12 : i32
    %30 = arith.extui %29 : i1 to i32
    %c0_i32_13 = arith.constant 0 : i32
    %31 = arith.cmpi ne, %30, %c0_i32_13 : i32
    scf.if %31 {
      %c0_14 = arith.constant 0 : index
      %c0_15 = arith.constant 0 : index
      %32 = vector.load %arg4[%c0_14, %c0_15] : memref<56x1xf32, #tpu.memory_space<vmem>>, vector<56x1xf32>
      %cst_16 = arith.constant dense<0.000000e+00> : vector<1xf32>
      %33 = vector.multi_reduction <add>, %32, %cst_16 [0] : vector<56x1xf32> to vector<1xf32>
      %34 = vector.shape_cast %33 : vector<1xf32> to vector<1x1xf32>
      %cst_17 = arith.constant 5.000000e+01 : f32
      %35 = vector.broadcast %cst_17 : f32 to vector<1x1xf32>
      %36 = arith.divf %34, %35 : vector<1x1xf32>
      %c0_18 = arith.constant 0 : index
      %c0_19 = arith.constant 0 : index
      %37 = vector.load %arg3[%c0_18, %c0_19] : memref<1x1xf32, #tpu.memory_space<vmem>>, vector<1x1xf32>
      tpu.vector_store %arg3[%c0_18, %c0_19], %36 {strides = array<i32>} : memref<1x1xf32, #tpu.memory_space<vmem>>, vector<1x1xf32>,
    } else {
    }
    return
  }
  func.func @transform_0(%arg0: i32) -> (i32, i32) {
    %c0_i32 = arith.constant 0 : i32
    %c0_i32_0 = arith.constant 0 : i32
    return %arg0, %c0_i32 : i32, i32
  }
  func.func @transform_1(%arg0: i32) -> (i32, i32) {
    %c0_i32 = arith.constant 0 : i32
    %c0_i32_0 = arith.constant 0 : i32
    return %arg0, %c0_i32 : i32, i32
  }
  func.func @transform_2(%arg0: i32) -> (i32, i32) {
    %c0_i32 = arith.constant 0 : i32
    %c0_i32_0 = arith.constant 0 : i32
    %c0_i32_1 = arith.constant 0 : i32
    return %c0_i32, %c0_i32_0 : i32, i32
  }
}

</mosaic_0001>

<bundles_post_ra>
// kernel: tpu_custom_call.1
= control target key start
LH: loop header
LB: loop body
LE: loop exit
PB: predicated region body
PF: predicated region fallthrough
CT: control target
= control target key end

     0   :  { %vm59_vm0 = vcmask 261120   ;;  %s468_s0 = inlined_call_operand.vmem [shape: f32[50,32], index: 0, kind: input, shape index: {}]   ;;  %s469_s1 = inlined_call_operand.vmem [shape: f32[50,32], index: 1, kind: input, shape index: {}]   ;;  %s470_s2 = inlined_call_operand.hbm [shape: f32[1,1], index: 2, kind: output, shape index: {}]  }
   0x1   :  { %v26_v0 = vld [vmem:[%s468_s0 + $0x10] sm:$0xff]  ;;  %v24_v2 = vld [vmem:[%s468_s0] sm:$0xff]  ;;  %v27_v5 = vld [vmem:[%s468_s0 + $0x18] sm:$0xff] }
   0x2   :  { %v33_v1 = vld [vmem:[%s469_s1 + $0x10] sm:$0xff]  ;;  %v31_v4 = vld [vmem:[%s469_s1] sm:$0xff]  ;;  %v34_v6 = vld [vmem:[%s469_s1 + $0x18] sm:$0xff] }
   0x3   :  { %v40_v3 = vsub.f32 %v26_v0, %v33_v1  ;;  %v38_v7 = vsub.f32 %v24_v2, %v31_v4  ;;  %v41_v8 = vsub.f32 %v27_v5, %v34_v6  ;;  %v25_v9 = vld [vmem:[%s468_s0 + $0x8] sm:$0xff]  ;;  %v28_v15 = vld [vmem:[%s468_s0 + $0x20] sm:$0xff]  ;;  %v30_v21 = vld [vmem:[%s468_s0 + $0x30] sm:$0xff] }
   0x4   :  { %v32_v10 = vld [vmem:[%s469_s1 + $0x8] sm:$0xff]  ;;  %v35_v16 = vld [vmem:[%s469_s1 + $0x20] sm:$0xff]  ;;  %v37_v22 = vld [vmem:[%s469_s1 + $0x30] sm:$0xff] }
   0x5   :  { %v29_v11 = vld [vmem:[%s468_s0 + $0x28] sm:$0xff]  ;;  %v47_v12 = vadd.f32 1e-06, %v40_v3  ;;  %v39_v13 = vsub.f32 %v25_v9, %v32_v10  ;;  %v45_v17 = vadd.f32 1e-06, %v38_v7  ;;  %v42_v20 = vsub.f32 %v28_v15, %v35_v16 }
   0x6   :  { %v36_v14 = vld [vmem:[%s469_s1 + $0x28] sm:$0xff]  ;;  %v48_v18 = vadd.f32 1e-06, %v41_v8  ;;  %v44_v25 = vsub.f32 %v30_v21, %v37_v22 }
   0x7   :  { %v43_v19 = vsub.f32 %v29_v11, %v36_v14  ;;  %v54_v23 = vmul.f32 %v47_v12, %v47_v12  ;;  %v46_v24 = vadd.f32 1e-06, %v39_v13 }
   0x8   :  { %7 = vsyncpa [#allocation4], 0  ;;  %v52_v26 = vmul.f32 %v45_v17, %v45_v17  ;;  %v55_v27 = vmul.f32 %v48_v18, %v48_v18  ;;  %v49_v29 = vadd.f32 1e-06, %v42_v20  ;;  %v51_v37 = vadd.f32 1e-06, %v44_v25 }
   0x9   :  { %v50_v28 = vadd.f32 1e-06, %v43_v19  ;;  %v66_v30 = vsel %vm59_vm0, %v54_v23, 0.0  ;;  %v53_v31 = vmul.f32 %v46_v24, %v46_v24  ;;  %vm16_vm1 = vcmask 7168   ;;  %s299_s0 = smov [#allocation3]  }
   0xa   :  { %67 = vadd.xlane.f32.xlu1 %v66_v30  ;;  %v60_v32 = vsel %vm59_vm0, %v52_v26, 0.0  ;;  %v69_v33 = vsel %vm59_vm0, %v55_v27, 0.0  ;;  %v56_v36 = vmul.f32 %v49_v29, %v49_v29  ;;  %v58_v40 = vmul.f32 %v51_v37, %v51_v37  ;;  %s250_s1 = sshll.u32 %s299_s0, 4  ;;  %s251_s1 = int_to_ptr.vmem [resolvable:$true] %s250_s1 }
   0xb   :  { %61 = vadd.xlane.f32.xlu0 %v60_v32  ;;  %v57_v34 = vmul.f32 %v50_v28, %v50_v28  ;;  %v63_v35 = vsel %vm59_vm0, %v53_v31, 0.0  ;;  %v298_v42 = vmov 0.0   ;;  %v158_v47 = vlaneseq  ;;  %s274_s9 = scalar_lea.vmem %s251_s1, 16  ;;  %s278_s10 = scalar_lea.vmem %s251_s1, 32 }
   0xc   :  { %v72_v39 = vsel %vm59_vm0, %v56_v36, 0.0  ;;  %v78_v41 = vsel %vm59_vm0, %v58_v40, 0.0  ;;  %19 = vst.msk [vmem:[#allocation2 + $0x10] sm:$0xff] %vm16_vm1, %v298_v42  ;;  %17 = vst.msk [vmem:[#allocation2] sm:$0xff] %vm16_vm1, %v298_v42  ;;  %p275_p0 = scmp.ne.s32.totalorder %s251_s1, %s274_s9  ;;  %p279_p1 = scmp.lt.s32.totalorder %s251_s1, %s251_s1 }
   0xd   :  { %v75_v38 = vsel %vm59_vm0, %v57_v34, 0.0  ;;  %18 = vst.msk [vmem:[#allocation2 + $0x8] sm:$0xff] %vm16_vm1, %v298_v42  ;;  %20 = vst.msk [vmem:[#allocation2 + $0x18] sm:$0xff] %vm16_vm1, %v298_v42  ;;  %v386_v51 = vshrl.u32 %v158_v47, 7  ;;  %p280_p2 = scmp.lt.s32.totalorder %s278_s10, %s274_s9 }
   0xe   :  { %70 = vadd.xlane.f32.xlu1 %v69_v33  ;;  %21 = vst.msk [vmem:[#allocation2 + $0x20] sm:$0xff] %vm16_vm1, %v298_v42  ;;  %22 = vst.msk [vmem:[#allocation2 + $0x28] sm:$0xff] %vm16_vm1, %v298_v42 }
   0xf   :  { %64 = vadd.xlane.f32.xlu0 %v63_v35  ;;  %23 = vst.msk [vmem:[#allocation2 + $0x30] sm:$0xff] %vm16_vm1, %v298_v42  ;;  %p281_p3 = por %p280_p2, %p279_p1 }
  0x11   :  { %p282_p4 = pnand %p281_p3, %p275_p0 }
  0x12   :  { %76 = vadd.xlane.f32.xlu1 %v75_v38 }
  0x13   :  { %73 = vadd.xlane.f32.xlu0 %v72_v39  ;;  %v191_v18 = vld [vmem:[#allocation2 + $0x10] sm:$0xff]  ;;  %v189_v23 = vld [vmem:[#allocation2] sm:$0xff] }
  0x14   :  { %v192_v37 = vld [vmem:[#allocation2 + $0x18] sm:$0xff]  ;;  %v190_v42 = vld [vmem:[#allocation2 + $0x8] sm:$0xff] }
  0x17   :  { %79 = vadd.xlane.f32.xlu0 %v78_v41 }
  0x97   :  { %v68_v43 = vpop.xlane.xlu1 %67 }
  0x98   :  { %260 = vrsqrt.f32 %v68_v43  ;;  %v371_v44 = vpop.xlane.xlu0 %61  ;;  %vm97_vm2 = vcmp.eq.f32.partialorder %v68_v43, inf  ;;  %vm99_vm3 = vcmp.eq.f32.partialorder %v68_v43, 0.0  ;;  %v100_v54 = vand.u32 2147483648, %v68_v43 }
  0x99   :  { %262 = vrsqrt.f32 %v371_v44  ;;  %vm83_vm4 = vcmp.eq.f32.partialorder %v371_v44, inf  ;;  %vm85_vm5 = vcmp.eq.f32.partialorder %v371_v44, 0.0  ;;  %v86_v56 = vand.u32 2147483648, %v371_v44 }
  0x9b   :  { %v374_v45 = vpop.xlane.xlu1 %70 }
  0x9c   :  { %264 = vrsqrt.f32 %v374_v45  ;;  %v377_v46 = vpop.xlane.xlu0 %64  ;;  %vm104_vm6 = vcmp.eq.f32.partialorder %v374_v45, inf  ;;  %vm106_vm7 = vcmp.eq.f32.partialorder %v374_v45, 0.0  ;;  %v107_v62 = vand.u32 2147483648, %v374_v45 }
  0x9d   :  { %266 = vrsqrt.f32 %v377_v46  ;;  %vm90_vm8 = vcmp.eq.f32.partialorder %v377_v46, inf  ;;  %vm92_vm9 = vcmp.eq.f32.partialorder %v377_v46, 0.0  ;;  %v93_v5 = vand.u32 2147483648, %v377_v46 }
  0x9f   :  { %v380_v48 = vpop.xlane.xlu1 %76 }
  0xa0   :  { %268 = vrsqrt.f32 %v380_v48  ;;  %v383_v49 = vpop.xlane.xlu0 %73  ;;  %vm118_vm10 = vcmp.eq.f32.partialorder %v380_v48, inf  ;;  %vm120_vm11 = vcmp.eq.f32.partialorder %v380_v48, 0.0  ;;  %v121_v8 = vand.u32 2147483648, %v380_v48 }
  0xa1   :  { %270 = vrsqrt.f32 %v383_v49  ;;  %vm111_vm12 = vcmp.eq.f32.partialorder %v383_v49, inf  ;;  %vm113_vm13 = vcmp.eq.f32.partialorder %v383_v49, 0.0  ;;  %v114_v26 = vand.u32 2147483648, %v383_v49 }
  0xa2   :  { %v261_v50 = vpop.eup %260 }
  0xa3   :  { %v263_v52 = vpop.eup %262  ;;  %v96_v53 = vmul.f32 %v261_v50, %v68_v43 }
  0xa4   :  { %v82_v55 = vmul.f32 %v263_v52, %v371_v44  ;;  %v392_v57 = vpop.xlane.xlu0 %79 }
  0xa5   :  { %v98_v58 = vsel %vm97_vm2, %v68_v43, %v96_v53  ;;  %272 = vrsqrt.f32 %v392_v57  ;;  %vm125_vm14 = vcmp.eq.f32.partialorder %v392_v57, inf  ;;  %vm127_vm15 = vcmp.eq.f32.partialorder %v392_v57, 0.0 }
  0xa6   :  { %v265_v59 = vpop.eup %264  ;;  %v101_v60 = vsel %vm99_vm3, %v100_v54, %v98_v58  ;;  %v84_v61 = vsel %vm83_vm4, %v371_v44, %v82_v55  ;;  %vm242_vm2 = vcmask 0  }
  0xa7   :  { %v267_v63 = vpop.eup %266  ;;  %v132_v0 = vsub.f32 2.0, %v101_v60  ;;  %v87_v1 = vsel %vm85_vm5, %v86_v56, %v84_v61  ;;  %v103_v2 = vmul.f32 %v265_v59, %v374_v45  ;;  %v193_v61 = vld [vmem:[#allocation2 + $0x20] sm:$0xff] }
  0xa8   :  { %v130_v3 = vsub.f32 2.0, %v87_v1  ;;  %v89_v4 = vmul.f32 %v267_v63, %v377_v46 }
  0xa9   :  { %v139_v6 = vmax.f32 %v132_v0, 0.0  ;;  %v105_v7 = vsel %vm104_vm6, %v374_v45, %v103_v2 }
  0xaa   :  { %v269_v9 = vpop.eup %268  ;;  %v137_v10 = vmax.f32 %v130_v3, 0.0  ;;  %v108_v11 = vsel %vm106_vm7, %v107_v62, %v105_v7  ;;  %v91_v12 = vsel %vm90_vm8, %v377_v46, %v89_v4  ;;  %v165_v62 = vadd.s32 48, %v386_v51  ;;  %v195_v4 = vld [vmem:[#allocation2 + $0x30] sm:$0xff] }
  0xab   :  { %v271_v13 = vpop.eup %270  ;;  %v146_v14 = vmul.f32 %v139_v6, %v139_v6  ;;  %v133_v15 = vsub.f32 2.0, %v108_v11  ;;  %v94_v16 = vsel %vm92_vm9, %v93_v5, %v91_v12  ;;  %v117_v17 = vmul.f32 %v269_v9, %v380_v48 }
  0xac   :  { %v144_v19 = vmul.f32 %v137_v10, %v137_v10  ;;  %v131_v20 = vsub.f32 2.0, %v94_v16  ;;  %v110_v21 = vmul.f32 %v271_v13, %v383_v49  ;;  %vm181_vm0 = vcmp.lt.s32.totalorder %v165_v62, 50 }
  0xad   :  { %v153_v22 = vadd.f32 %v146_v14, %v68_v43  ;;  %v140_v24 = vmax.f32 %v133_v15, 0.0  ;;  %v119_v25 = vsel %vm118_vm10, %v380_v48, %v117_v17 }
  0xae   :  { %v151_v27 = vadd.f32 %v144_v19, %v371_v44  ;;  %v138_v28 = vmax.f32 %v131_v20, 0.0  ;;  %v122_v29 = vsel %vm120_vm11, %v121_v8, %v119_v25  ;;  %v112_v30 = vsel %vm111_vm12, %v383_v49, %v110_v21 }
  0xaf   :  { %v273_v31 = vpop.eup %272  ;;  %v198_v32 = vadd.f32 %v191_v18, %v153_v22  ;;  %v147_v33 = vmul.f32 %v140_v24, %v140_v24  ;;  %v135_v34 = vsub.f32 2.0, %v122_v29  ;;  %v115_v35 = vsel %vm113_vm13, %v114_v26, %v112_v30 }
  0xb0   :  { %v196_v36 = vadd.f32 %v189_v23, %v151_v27  ;;  %v145_v38 = vmul.f32 %v138_v28, %v138_v28  ;;  %v134_v39 = vsub.f32 2.0, %v115_v35  ;;  %v124_v40 = vmul.f32 %v273_v31, %v392_v57 }
  0xb1   :  { %206 = vst.msk [vmem:[#allocation2 + $0x10] sm:$0xff] %vm16_vm1, %v198_v32  ;;  %v154_v41 = vadd.f32 %v147_v33, %v374_v45  ;;  %v142_v43 = vmax.f32 %v135_v34, 0.0  ;;  %v128_v44 = vand.u32 2147483648, %v392_v57  ;;  %v194_v45 = vld [vmem:[#allocation2 + $0x28] sm:$0xff] }
  0xb2   :  { %204 = vst.msk [vmem:[#allocation2] sm:$0xff] %vm16_vm1, %v196_v36  ;;  %v152_v47 = vadd.f32 %v145_v38, %v377_v46  ;;  %v141_v50 = vmax.f32 %v134_v39, 0.0  ;;  %v126_v52 = vsel %vm125_vm14, %v392_v57, %v124_v40 }
  0xb3   :  { %v199_v53 = vadd.f32 %v192_v37, %v154_v41  ;;  %v149_v54 = vmul.f32 %v142_v43, %v142_v43  ;;  %v129_v55 = vsel %vm127_vm15, %v128_v44, %v126_v52 }
  0xb4   :  { %v197_v56 = vadd.f32 %v190_v42, %v152_v47  ;;  %v148_v58 = vmul.f32 %v141_v50, %v141_v50  ;;  %v136_v59 = vsub.f32 2.0, %v129_v55 }
  0xb5   :  { %207 = vst.msk [vmem:[#allocation2 + $0x18] sm:$0xff] %vm16_vm1, %v199_v53  ;;  %v156_v60 = vadd.f32 %v149_v54, %v380_v48 }
  0xb6   :  { %205 = vst.msk [vmem:[#allocation2 + $0x8] sm:$0xff] %vm16_vm1, %v197_v56  ;;  %v155_v46 = vadd.f32 %v148_v58, %v383_v49  ;;  %v143_v63 = vmax.f32 %v136_v59, 0.0 }
  0xb7   :  { %v201_v0 = vadd.f32 %v194_v45, %v156_v60 }
  0xb8   :  { %v200_v1 = vadd.f32 %v193_v61, %v155_v46  ;;  %v150_v2 = vmul.f32 %v143_v63, %v143_v63  ;;  %v216_v7 = vld [vmem:[#allocation2 + $0x10] sm:$0xff] }
  0xb9   :  { %209 = vst.msk [vmem:[#allocation2 + $0x28] sm:$0xff] %vm16_vm1, %v201_v0  ;;  %v214_v48 = vld [vmem:[#allocation2] sm:$0xff]  ;;  %v224_v11 = vsel %vm16_vm1, %v216_v7, 0.0 }
  0xba   :  { %208 = vst.msk [vmem:[#allocation2 + $0x20] sm:$0xff] %vm16_vm1, %v200_v1  ;;  %v157_v3 = vadd.f32 %v150_v2, %v392_v57  ;;  %v221_v8 = vsel %vm16_vm1, %v214_v48, 0.0 }
  0xbc   :  { %v188_v5 = vsel %vm181_vm0, %v157_v3, 0.0  ;;  %v217_v9 = vld [vmem:[#allocation2 + $0x18] sm:$0xff] }
  0xbd   :  { %v202_v6 = vadd.f32 %v195_v4, %v188_v5  ;;  %v215_v51 = vld [vmem:[#allocation2 + $0x8] sm:$0xff]  ;;  %v226_v57 = vsel %vm16_vm1, %v217_v9, 0.0 }
  0xbe   :  { %v222_v49 = vsel %vm16_vm1, %v215_v51, 0.0 }
  0xbf   :  { %210 = vst.msk [vmem:[#allocation2 + $0x30] sm:$0xff] %vm16_vm1, %v202_v6  ;;  %v223_v10 = vadd.f32 %v222_v49, %v221_v8 }
  0xc0   :  { %v219_v14 = vld [vmem:[#allocation2 + $0x28] sm:$0xff] }
  0xc1   :  { %v218_v12 = vld [vmem:[#allocation2 + $0x20] sm:$0xff]  ;;  %v225_v13 = vadd.f32 %v224_v11, %v223_v10  ;;  %v230_v19 = vsel %vm16_vm1, %v219_v14, 0.0 }
  0xc2   :  { %v228_v16 = vsel %vm16_vm1, %v218_v12, 0.0 }
  0xc3   :  { %v227_v15 = vadd.f32 %v226_v57, %v225_v13 }
  0xc5   :  { %v229_v17 = vadd.f32 %v228_v16, %v227_v15 }
  0xc6   :  { %v220_v18 = vld [vmem:[#allocation2 + $0x30] sm:$0xff] }
  0xc7   :  { %v231_v20 = vadd.f32 %v230_v19, %v229_v17  ;;  %v232_v21 = vsel %vm16_vm1, %v220_v18, 0.0 }
  0xc9   :  { %v233_v22 = vadd.f32 %v232_v21, %v231_v20 }
  0xcb   :  { %v234_v23 = vrot.slane %v233_v22, 4 }
  0xcd   :  { %v235_v24 = vadd.f32 %v234_v23, %v233_v22 }
  0xcf   :  { %v236_v25 = vrot.slane %v235_v24, 2 }
  0xd1   :  { %v237_v26 = vadd.f32 %v236_v25, %v235_v24 }
  0xd3   :  { %v238_v27 = vrot.slane %v237_v26, 1 }
  0xd5   :  { %v239_v28 = vadd.f32 %v238_v27, %v237_v26 }
  0xd7   :  { %v241_v29 = vmul.f32 0.02, %v239_v28 }
  0xd9   :  { %243 = vst.msk [vmem:[#allocation3] sm:$0x1] %vm242_vm2, %v241_v29 }
  0xda   :  { %285 = shalt.err (!%p282_p4)
}
  0xdb   :  { %s286_s13 = scalar_lea.hbm %s470_s2, 16 }
  0xdc   :  { %p287_p5 = scmp.ne.s32.totalorder %s470_s2, %s286_s13  ;;  %p290_p6 = scmp.lt.u32.totalorder %s286_s13, %s470_s2 }
  0xde   :  { %p292_p7 = pnand %p290_p6, %p287_p5 }
  0xe0   :  { %295 = shalt.err (!%p292_p7)
}
  0xe1   :  { %253 = dma.vmem_to_hbm [thread:$0]  %s251_s1, 16, %s470_s2, [#allocation4]  }
  0xe2   :  { %296 = dma.done.wait [#allocation4], 16  }
  0xe3   :  { %297 = vsyncadd [#allocation4], 4294967280 }
  0xe4   :  { %257 = vsyncpa [#allocation4], 1 }

</bundles_post_ra>
